<compile_context>
chip_gen: v7x
topology: tpu7x:2x2x1
jax: 0.10.0
libtpu: 0.0.40
codegen_flags: <defaults>
</compile_context>

<pallas_src>
import functools

import jax
import jax.numpy as jnp
from jax.experimental import pallas as pl
from jax.experimental.pallas import tpu as pltpu

# ----- module hyperparameters (from the PyTorch __init__) -----
NUM_TASKS = 3                  # T
USER_ID_HASH_SIZE = 100
USER_ID_EMBEDDING_DIM = 50     # DU
USER_FEATURES_SIZE = 10        # IU
ITEM_ID_HASH_SIZE = 200
ITEM_ID_EMBEDDING_DIM = 30     # DI
USER_VALUE_WEIGHTS = [0.5, 0.3, 0.2]   # not used in forward()

TASK_PAD = 128                 # lane-dense padded task dimension


def _estimator_kernel(uid_ref, iid_ref,           # SMEM scalar-prefetch ids (Bp,)
                      uf_ref,                     # (TB, IU) VMEM
                      utab_hbm, itab_hbm,         # (H_U, DU) / (H_I, DI) in HBM
                      w_uf_ref,                   # (IU, DU) VMEM, resident
                      wt_u_ref, wt_f_ref, wt_i_ref,  # (DU,128),(DU,128),(DI,128)
                      b_ref,                      # (1, 128) folded bias
                      out_ref,                    # (TB, 128)
                      u_emb, i_emb,               # VMEM scratch (TB,DU),(TB,DI)
                      sems,                       # DMA semaphores (2,)
                      *, batch_size):             # static true batch size
    tb = out_ref.shape[0]
    base = pl.program_id(0) * tb
    # Number of real (non-padding) rows in this tile; bound all gathers by it.
    nv = jnp.minimum(tb, batch_size - base)

    # Partial tile: zero the scratch so rows past `nv` never hold stale VMEM.
    @pl.when(nv < tb)
    def _():
        u_emb[...] = jnp.zeros_like(u_emb)
        i_emb[...] = jnp.zeros_like(i_emb)

    # 1) Issue per-row gather DMAs for the valid rows of this tile.
    @pl.loop(0, nv)
    def _issue(r):
        uidx = uid_ref[base + r]
        iidx = iid_ref[base + r]
        pltpu.make_async_copy(utab_hbm.at[pl.ds(uidx, 1)],
                              u_emb.at[pl.ds(r, 1)], sems.at[0]).start()
        pltpu.make_async_copy(itab_hbm.at[pl.ds(iidx, 1)],
                              i_emb.at[pl.ds(r, 1)], sems.at[1]).start()

    # 2) Overlap: user_features linear + its task contribution while DMAs fly.
    #    (b_uf is folded into b_ref by the wrapper: b_ref = b_uf@wt_f + b_task)
    uf_t = jnp.dot(uf_ref[...], w_uf_ref[...], preferred_element_type=jnp.float32)
    acc = jnp.dot(uf_t, wt_f_ref[...], preferred_element_type=jnp.float32) + b_ref[...]

    # 3) Wait for all gathers of this tile (byte counts match the issues).
    @pl.loop(0, nv)
    def _wait(r):
        pltpu.make_async_copy(utab_hbm.at[pl.ds(0, 1)],
                              u_emb.at[pl.ds(r, 1)], sems.at[0]).wait()
        pltpu.make_async_copy(itab_hbm.at[pl.ds(0, 1)],
                              i_emb.at[pl.ds(r, 1)], sems.at[1]).wait()

    # 4) Task contributions of the gathered embeddings (concat split into sums).
    acc = acc + jnp.dot(u_emb[...], wt_u_ref[...], preferred_element_type=jnp.float32)
    acc = acc + jnp.dot(i_emb[...], wt_i_ref[...], preferred_element_type=jnp.float32)
    out_ref[...] = acc.astype(out_ref.dtype)


def multi_task_estimator_forward(user_id, user_features, item_id, params, *,
                                 max_tile_b=128):
    """user_id: (B,) int, user_features: (B, IU) f32, item_id: (B,) int."""
    B = user_id.shape[0]
    T = NUM_TASKS
    DU, DI, IU, TP = (USER_ID_EMBEDDING_DIM, ITEM_ID_EMBEDDING_DIM,
                      USER_FEATURES_SIZE, TASK_PAD)

    # Adaptive tile: small batches use a single small tile instead of a padded
    # 128-row tile (avoids hundreds of useless gather DMAs when B is tiny).
    tile_b = min(max_tile_b, ((B + 7) // 8) * 8)
    assert tile_b % 8 == 0

    # Pad the batch to a whole number of tiles (padded rows use id 0 / zeros).
    Bp = pl.cdiv(B, tile_b) * tile_b
    pad = Bp - B
    uid = jnp.pad(user_id.astype(jnp.int32), (0, pad))
    iid = jnp.pad(item_id.astype(jnp.int32), (0, pad))
    uf = jnp.pad(user_features.astype(jnp.float32), ((0, pad), (0, 0)))

    # Split the task weight along the concat axis and zero-pad T=3 -> 128 lanes.
    wt = params["w_task"]                                    # (2*DU + DI, T)
    pad_t = ((0, 0), (0, TP - T))
    wt_u = jnp.pad(wt[:DU], pad_t)                           # (DU, 128)
    wt_f = jnp.pad(wt[DU:2 * DU], pad_t)                     # (DU, 128)
    wt_i = jnp.pad(wt[2 * DU:], pad_t)                       # (DI, 128)
    # Fold both biases: b_comb = b_uf @ wt_f + b_task (exact algebra).
    b_comb = jnp.pad(params["b_uf"] @ wt[DU:2 * DU] + params["b_task"], pad_t)

    const = lambda i, u, it: (0, 0)
    kernel = functools.partial(_estimator_kernel, batch_size=B)
    out = pl.pallas_call(
        kernel,
        out_shape=jax.ShapeDtypeStruct((Bp, TP), jnp.float32),
        grid_spec=pltpu.PrefetchScalarGridSpec(
            num_scalar_prefetch=2,
            grid=(Bp // tile_b,),
            in_specs=[
                pl.BlockSpec((tile_b, IU), lambda i, u, it: (i, 0)),  # user_features
                pl.BlockSpec(memory_space=pl.ANY),                    # user_table (HBM)
                pl.BlockSpec(memory_space=pl.ANY),                    # item_table (HBM)
                pl.BlockSpec((IU, DU), const),                        # w_uf
                pl.BlockSpec((DU, TP), const),                        # wt_u
                pl.BlockSpec((DU, TP), const),                        # wt_f
                pl.BlockSpec((DI, TP), const),                        # wt_i
                pl.BlockSpec((1, TP), const),                         # b_comb
            ],
            out_specs=pl.BlockSpec((tile_b, TP), lambda i, u, it: (i, 0)),
            scratch_shapes=[
                pltpu.VMEM((tile_b, DU), jnp.float32),
                pltpu.VMEM((tile_b, DI), jnp.float32),
                pltpu.SemaphoreType.DMA((2,)),
            ]),
        compiler_params=pltpu.CompilerParams(
            dimension_semantics=("parallel",)),
    )(uid, iid, uf,
      params["user_table"], params["item_table"],
      params["w_uf"], wt_u, wt_f, wt_i, b_comb)
    return out[:B, :T]


def init_params(key):
    ks = jax.random.split(key, 6)
    du, di, iu, t = (USER_ID_EMBEDDING_DIM, ITEM_ID_EMBEDDING_DIM,
                     USER_FEATURES_SIZE, NUM_TASKS)
    comb = 2 * du + di
    return {
        # nn.Embedding default init: N(0, 1)
        "user_table": jax.random.normal(ks[0], (USER_ID_HASH_SIZE, du), jnp.float32),
        "item_table": jax.random.normal(ks[1], (ITEM_ID_HASH_SIZE, di), jnp.float32),
        # nn.Linear init: U(-1/sqrt(in), 1/sqrt(in)); stored pre-transposed (in, out)
        "w_uf": jax.random.uniform(ks[2], (iu, du), jnp.float32,
                                   -1.0 / iu ** 0.5, 1.0 / iu ** 0.5),
        "b_uf": jax.random.uniform(ks[3], (1, du), jnp.float32,
                                   -1.0 / iu ** 0.5, 1.0 / iu ** 0.5),
        "w_task": jax.random.uniform(ks[4], (comb, t), jnp.float32,
                                     -1.0 / comb ** 0.5, 1.0 / comb ** 0.5),
        "b_task": jax.random.uniform(ks[5], (1, t), jnp.float32,
                                     -1.0 / comb ** 0.5, 1.0 / comb ** 0.5),
    }


def _reference(user_id, user_features, item_id, params):
    uf_t = user_features @ params["w_uf"] + params["b_uf"]
    comb = jnp.concatenate([params["user_table"][user_id], uf_t,
                            params["item_table"][item_id]], axis=1)
    return comb @ params["w_task"] + params["b_task"]


if __name__ == "__main__":
    key = jax.random.PRNGKey(0)
    pkey, fkey, ukey, ikey = jax.random.split(key, 4)
    params = init_params(pkey)

    # Case 1: the module's own sample batch (B = 3, exercises the small-tile path).
    user_id = jnp.array([1, 2, 3], dtype=jnp.int32)
    item_id = jnp.array([4, 5, 6], dtype=jnp.int32)
    user_features = jax.random.normal(fkey, (3, USER_FEATURES_SIZE), jnp.float32)
    out = multi_task_estimator_forward(user_id, user_features, item_id, params)
    jax.block_until_ready(out)
    ref = _reference(user_id, user_features, item_id, params)
    assert out.shape == (3, NUM_TASKS)
    assert jnp.allclose(out, ref, atol=1e-4), "mismatch vs reference (B=3)"

    # Case 2: a multi-tile batch (B = 256 -> 2 grid steps of 128 rows).
    B = 256
    user_id2 = jax.random.randint(ukey, (B,), 0, USER_ID_HASH_SIZE, jnp.int32)
    item_id2 = jax.random.randint(ikey, (B,), 0, ITEM_ID_HASH_SIZE, jnp.int32)
    user_features2 = jax.random.normal(fkey, (B, USER_FEATURES_SIZE), jnp.float32)
    out2 = multi_task_estimator_forward(user_id2, user_features2, item_id2, params)
    jax.block_until_ready(out2)
    ref2 = _reference(user_id2, user_features2, item_id2, params)
    assert out2.shape == (B, NUM_TASKS)
    assert jnp.allclose(out2, ref2, atol=1e-4), "mismatch vs reference (B=256)"

    print("KERNEL_OK")
</pallas_src>

<mosaic_0001>
module attributes {stable_mosaic.version = 11 : i64} {
  func.func @_estimator_kernel(%arg0: i32, %arg1: memref<8xi32, #tpu.memory_space<smem>>, %arg2: memref<8xi32, #tpu.memory_space<smem>>, %arg3: memref<8x10xf32, #tpu.memory_space<vmem>>, %arg4: memref<100x50xf32, #tpu.memory_space<any>>, %arg5: memref<200x30xf32, #tpu.memory_space<any>>, %arg6: memref<10x50xf32, #tpu.memory_space<vmem>>, %arg7: memref<50x128xf32, #tpu.memory_space<vmem>>, %arg8: memref<50x128xf32, #tpu.memory_space<vmem>>, %arg9: memref<30x128xf32, #tpu.memory_space<vmem>>, %arg10: memref<1x128xf32, #tpu.memory_space<vmem>>, %arg11: memref<8x128xf32, #tpu.memory_space<vmem>>, %arg12: memref<8x50xf32, #tpu.memory_space<vmem>>, %arg13: memref<8x30xf32, #tpu.memory_space<vmem>>, %arg14: memref<2x!tpu.dma_semaphore, #tpu.memory_space<semaphore_mem>>) attributes {dimension_semantics = [#tpu.dimension_semantics<parallel>], iteration_bounds = array<i64: 1>, scalar_prefetch = 2 : i64, scratch_operands = 3 : i64, tpu.core_type = #tpu.core_type<tc>, window_params = [{transform_indices = @transform_0, window_bounds = array<i64: 8, 10>}, {}, {}, {pipeline_mode = #tpu.pipeline_mode<synchronous>, transform_indices = @transform_3, window_bounds = array<i64: 10, 50>}, {pipeline_mode = #tpu.pipeline_mode<synchronous>, transform_indices = @transform_4, window_bounds = array<i64: 50, 128>}, {pipeline_mode = #tpu.pipeline_mode<synchronous>, transform_indices = @transform_5, window_bounds = array<i64: 50, 128>}, {pipeline_mode = #tpu.pipeline_mode<synchronous>, transform_indices = @transform_6, window_bounds = array<i64: 30, 128>}, {pipeline_mode = #tpu.pipeline_mode<synchronous>, transform_indices = @transform_7, window_bounds = array<i64: 1, 128>}, {transform_indices = @transform_8, window_bounds = array<i64: 8, 128>}]} {
    %c8_i32 = arith.constant 8 : i32
    %0 = arith.muli %arg0, %c8_i32 : i32
    %c3_i32 = arith.constant 3 : i32
    %1 = arith.subi %c3_i32, %0 : i32
    %c8_i32_0 = arith.constant 8 : i32
    %2 = arith.minsi %c8_i32_0, %1 : i32
    %c8_i32_1 = arith.constant 8 : i32
    %3 = arith.cmpi slt, %2, %c8_i32_1 : i32
    %4 = arith.extui %3 : i1 to i32
    %c0_i32 = arith.constant 0 : i32
    %5 = arith.cmpi ne, %4, %c0_i32 : i32
    scf.if %5 {
      %cst_37 = arith.constant 0.000000e+00 : f32
      %35 = vector.broadcast %cst_37 : f32 to vector<8x50xf32>
      %c0_38 = arith.constant 0 : index
      %c0_39 = arith.constant 0 : index
      %36 = vector.load %arg12[%c0_38, %c0_39] : memref<8x50xf32, #tpu.memory_space<vmem>>, vector<8x50xf32>
      tpu.vector_store %arg12[%c0_38, %c0_39], %35 {strides = array<i32>} : memref<8x50xf32, #tpu.memory_space<vmem>>, vector<8x50xf32>,
      %cst_40 = arith.constant 0.000000e+00 : f32
      %37 = vector.broadcast %cst_40 : f32 to vector<8x30xf32>
      %c0_41 = arith.constant 0 : index
      %c0_42 = arith.constant 0 : index
      %38 = vector.load %arg13[%c0_41, %c0_42] : memref<8x30xf32, #tpu.memory_space<vmem>>, vector<8x30xf32>
      tpu.vector_store %arg13[%c0_41, %c0_42], %37 {strides = array<i32>} : memref<8x30xf32, #tpu.memory_space<vmem>>, vector<8x30xf32>,
    } else {
    }
    %c0_i32_2 = arith.constant 0 : i32
    %6 = arith.subi %2, %c0_i32_2 : i32
    %c1_i32 = arith.constant 1 : i32
    %c1_i32_3 = arith.constant 1 : i32
    %7 = arith.subi %c1_i32, %c1_i32_3 : i32
    %8 = arith.addi %6, %7 : i32
    %c1_i32_4 = arith.constant 1 : i32
    %9 = arith.divsi %8, %c1_i32_4 : i32
    %c1_i32_5 = arith.constant 1 : i32
    %c0_i32_6 = arith.constant 0 : i32
    %c0_i32_7 = arith.constant 0 : i32
    %10 = arith.subi %9, %c0_i32_7 : i32
    %11 = arith.addi %c0_i32_7, %10 : i32
    %c1_i32_8 = arith.constant 1 : i32
    scf.for %arg15 = %c0_i32_7 to %11 step %c1_i32_8  : i32 {
      %35 = arith.muli %arg15, %c1_i32_5 : i32
      %36 = arith.addi %c0_i32_6, %35 : i32
      %37 = arith.addi %0, %36 : i32
      %38 = arith.index_cast %37 : i32 to index
      %39 = memref.load %arg1[%38] : memref<8xi32, #tpu.memory_space<smem>>
      %40 = arith.addi %0, %36 : i32
      %41 = arith.index_cast %40 : i32 to index
      %42 = memref.load %arg2[%41] : memref<8xi32, #tpu.memory_space<smem>>
      %c0_i32_37 = arith.constant 0 : i32
      %c0_i32_38 = arith.constant 0 : i32
      %43 = tpu.memref_slice %arg4[%39, %c0_i32_38] : memref<100x50xf32, #tpu.memory_space<any>> -> memref<1x50xf32, #tpu.memory_space<any>>
      %c0_i32_39 = arith.constant 0 : i32
      %44 = tpu.memref_slice %arg12[%36, %c0_i32_39] : memref<8x50xf32, #tpu.memory_space<vmem>> -> memref<1x50xf32, #tpu.memory_space<vmem>>
      %45 = tpu.memref_slice %arg14[%c0_i32_37] : memref<2x!tpu.dma_semaphore, #tpu.memory_space<semaphore_mem>> -> memref<1x!tpu.dma_semaphore, #tpu.memory_space<semaphore_mem>>
      %46 = tpu.memref_squeeze %45 : memref<1x!tpu.dma_semaphore, #tpu.memory_space<semaphore_mem>> -> memref<!tpu.dma_semaphore, #tpu.memory_space<semaphore_mem>>
      tpu.enqueue_dma source(%43 : memref<1x50xf32, #tpu.memory_space<any>>) target(%44 : memref<1x50xf32, #tpu.memory_space<vmem>>) target_semaphore(%46 : memref<!tpu.dma_semaphore, #tpu.memory_space<semaphore_mem>>)
      %c1_i32_40 = arith.constant 1 : i32
      %c0_i32_41 = arith.constant 0 : i32
      %47 = tpu.memref_slice %arg5[%42, %c0_i32_41] : memref<200x30xf32, #tpu.memory_space<any>> -> memref<1x30xf32, #tpu.memory_space<any>>
      %c0_i32_42 = arith.constant 0 : i32
      %48 = tpu.memref_slice %arg13[%36, %c0_i32_42] : memref<8x30xf32, #tpu.memory_space<vmem>> -> memref<1x30xf32, #tpu.memory_space<vmem>>
      %49 = tpu.memref_slice %arg14[%c1_i32_40] : memref<2x!tpu.dma_semaphore, #tpu.memory_space<semaphore_mem>> -> memref<1x!tpu.dma_semaphore, #tpu.memory_space<semaphore_mem>>
      %50 = tpu.memref_squeeze %49 : memref<1x!tpu.dma_semaphore, #tpu.memory_space<semaphore_mem>> -> memref<!tpu.dma_semaphore, #tpu.memory_space<semaphore_mem>>
      tpu.enqueue_dma source(%47 : memref<1x30xf32, #tpu.memory_space<any>>) target(%48 : memref<1x30xf32, #tpu.memory_space<vmem>>) target_semaphore(%50 : memref<!tpu.dma_semaphore, #tpu.memory_space<semaphore_mem>>)
    }
    %c0 = arith.constant 0 : index
    %c0_9 = arith.constant 0 : index
    %12 = vector.load %arg3[%c0, %c0_9] : memref<8x10xf32, #tpu.memory_space<vmem>>, vector<8x10xf32>
    %c0_10 = arith.constant 0 : index
    %c0_11 = arith.constant 0 : index
    %13 = vector.load %arg6[%c0_10, %c0_11] : memref<10x50xf32, #tpu.memory_space<vmem>>, vector<10x50xf32>
    %cst = arith.constant dense<0.000000e+00> : vector<8x50xf32>
    %14 = tpu.matmul %12, %13, %cst {dimension_numbers = #tpu.dot_dimension_numbers<[1], [0], [0], [1], [0, 0, 1, 1], [], []>} : vector<8x10xf32>, vector<10x50xf32>, vector<8x50xf32> -> vector<8x50xf32>
    %c0_12 = arith.constant 0 : index
    %c0_13 = arith.constant 0 : index
    %15 = vector.load %arg8[%c0_12, %c0_13] : memref<50x128xf32, #tpu.memory_space<vmem>>, vector<50x128xf32>
    %cst_14 = arith.constant dense<0.000000e+00> : vector<8x128xf32>
    %16 = tpu.matmul %14, %15, %cst_14 {dimension_numbers = #tpu.dot_dimension_numbers<[1], [0], [0], [1], [0, 0, 1, 1], [], []>} : vector<8x50xf32>, vector<50x128xf32>, vector<8x128xf32> -> vector<8x128xf32>
    %c0_15 = arith.constant 0 : index
    %c0_16 = arith.constant 0 : index
    %17 = vector.load %arg10[%c0_15, %c0_16] : memref<1x128xf32, #tpu.memory_space<vmem>>, vector<1x128xf32>
    %18 = vector.broadcast %17 : vector<1x128xf32> to vector<8x128xf32>
    %19 = arith.addf %16, %18 : vector<8x128xf32>
    %c0_i32_17 = arith.constant 0 : i32
    %20 = arith.subi %2, %c0_i32_17 : i32
    %c1_i32_18 = arith.constant 1 : i32
    %c1_i32_19 = arith.constant 1 : i32
    %21 = arith.subi %c1_i32_18, %c1_i32_19 : i32
    %22 = arith.addi %20, %21 : i32
    %c1_i32_20 = arith.constant 1 : i32
    %23 = arith.divsi %22, %c1_i32_20 : i32
    %c1_i32_21 = arith.constant 1 : i32
    %c0_i32_22 = arith.constant 0 : i32
    %c0_i32_23 = arith.constant 0 : i32
    %24 = arith.subi %23, %c0_i32_23 : i32
    %25 = arith.addi %c0_i32_23, %24 : i32
    %c1_i32_24 = arith.constant 1 : i32
    scf.for %arg15 = %c0_i32_23 to %25 step %c1_i32_24  : i32 {
      %35 = arith.muli %arg15, %c1_i32_21 : i32
      %36 = arith.addi %c0_i32_22, %35 : i32
      %c0_i32_37 = arith.constant 0 : i32
      %c0_i32_38 = arith.constant 0 : i32
      %c0_i32_39 = arith.constant 0 : i32
      %37 = tpu.memref_slice %arg4[%c0_i32_38, %c0_i32_39] : memref<100x50xf32, #tpu.memory_space<any>> -> memref<1x50xf32, #tpu.memory_space<any>>
      %c0_i32_40 = arith.constant 0 : i32
      %38 = tpu.memref_slice %arg12[%36, %c0_i32_40] : memref<8x50xf32, #tpu.memory_space<vmem>> -> memref<1x50xf32, #tpu.memory_space<vmem>>
      %39 = tpu.memref_slice %arg14[%c0_i32_37] : memref<2x!tpu.dma_semaphore, #tpu.memory_space<semaphore_mem>> -> memref<1x!tpu.dma_semaphore, #tpu.memory_space<semaphore_mem>>
      %40 = tpu.memref_squeeze %39 : memref<1x!tpu.dma_semaphore, #tpu.memory_space<semaphore_mem>> -> memref<!tpu.dma_semaphore, #tpu.memory_space<semaphore_mem>>
      tpu.wait_dma2 semaphore(%40 : memref<!tpu.dma_semaphore, #tpu.memory_space<semaphore_mem>>) src(%37 : memref<1x50xf32, #tpu.memory_space<any>>) dst(%38 : memref<1x50xf32, #tpu.memory_space<vmem>>)
      %c1_i32_41 = arith.constant 1 : i32
      %c0_i32_42 = arith.constant 0 : i32
      %c0_i32_43 = arith.constant 0 : i32
      %41 = tpu.memref_slice %arg5[%c0_i32_42, %c0_i32_43] : memref<200x30xf32, #tpu.memory_space<any>> -> memref<1x30xf32, #tpu.memory_space<any>>
      %c0_i32_44 = arith.constant 0 : i32
      %42 = tpu.memref_slice %arg13[%36, %c0_i32_44] : memref<8x30xf32, #tpu.memory_space<vmem>> -> memref<1x30xf32, #tpu.memory_space<vmem>>
      %43 = tpu.memref_slice %arg14[%c1_i32_41] : memref<2x!tpu.dma_semaphore, #tpu.memory_space<semaphore_mem>> -> memref<1x!tpu.dma_semaphore, #tpu.memory_space<semaphore_mem>>
      %44 = tpu.memref_squeeze %43 : memref<1x!tpu.dma_semaphore, #tpu.memory_space<semaphore_mem>> -> memref<!tpu.dma_semaphore, #tpu.memory_space<semaphore_mem>>
      tpu.wait_dma2 semaphore(%44 : memref<!tpu.dma_semaphore, #tpu.memory_space<semaphore_mem>>) src(%41 : memref<1x30xf32, #tpu.memory_space<any>>) dst(%42 : memref<1x30xf32, #tpu.memory_space<vmem>>)
    }
    %c0_25 = arith.constant 0 : index
    %c0_26 = arith.constant 0 : index
    %26 = vector.load %arg12[%c0_25, %c0_26] : memref<8x50xf32, #tpu.memory_space<vmem>>, vector<8x50xf32>
    %c0_27 = arith.constant 0 : index
    %c0_28 = arith.constant 0 : index
    %27 = vector.load %arg7[%c0_27, %c0_28] : memref<50x128xf32, #tpu.memory_space<vmem>>, vector<50x128xf32>
    %cst_29 = arith.constant dense<0.000000e+00> : vector<8x128xf32>
    %28 = tpu.matmul %26, %27, %cst_29 {dimension_numbers = #tpu.dot_dimension_numbers<[1], [0], [0], [1], [0, 0, 1, 1], [], []>} : vector<8x50xf32>, vector<50x128xf32>, vector<8x128xf32> -> vector<8x128xf32>
    %29 = arith.addf %19, %28 : vector<8x128xf32>
    %c0_30 = arith.constant 0 : index
    %c0_31 = arith.constant 0 : index
    %30 = vector.load %arg13[%c0_30, %c0_31] : memref<8x30xf32, #tpu.memory_space<vmem>>, vector<8x30xf32>
    %c0_32 = arith.constant 0 : index
    %c0_33 = arith.constant 0 : index
    %31 = vector.load %arg9[%c0_32, %c0_33] : memref<30x128xf32, #tpu.memory_space<vmem>>, vector<30x128xf32>
    %cst_34 = arith.constant dense<0.000000e+00> : vector<8x128xf32>
    %32 = tpu.matmul %30, %31, %cst_34 {dimension_numbers = #tpu.dot_dimension_numbers<[1], [0], [0], [1], [0, 0, 1, 1], [], []>} : vector<8x30xf32>, vector<30x128xf32>, vector<8x128xf32> -> vector<8x128xf32>
    %33 = arith.addf %29, %32 : vector<8x128xf32>
    %c0_35 = arith.constant 0 : index
    %c0_36 = arith.constant 0 : index
    %34 = vector.load %arg11[%c0_35, %c0_36] : memref<8x128xf32, #tpu.memory_space<vmem>>, vector<8x128xf32>
    tpu.vector_store %arg11[%c0_35, %c0_36], %33 {strides = array<i32>} : memref<8x128xf32, #tpu.memory_space<vmem>>, vector<8x128xf32>,
    return
  }
  func.func @transform_0(%arg0: i32, %arg1: memref<8xi32, #tpu.memory_space<smem>>, %arg2: memref<8xi32, #tpu.memory_space<smem>>) -> (i32, i32) {
    %c0_i32 = arith.constant 0 : i32
    %c0_i32_0 = arith.constant 0 : i32
    return %arg0, %c0_i32 : i32, i32
  }
  func.func @transform_3(%arg0: i32, %arg1: memref<8xi32, #tpu.memory_space<smem>>, %arg2: memref<8xi32, #tpu.memory_space<smem>>) -> (i32, i32) {
    %c0_i32 = arith.constant 0 : i32
    %c0_i32_0 = arith.constant 0 : i32
    %c0_i32_1 = arith.constant 0 : i32
    return %c0_i32, %c0_i32_0 : i32, i32
  }
  func.func @transform_4(%arg0: i32, %arg1: memref<8xi32, #tpu.memory_space<smem>>, %arg2: memref<8xi32, #tpu.memory_space<smem>>) -> (i32, i32) {
    %c0_i32 = arith.constant 0 : i32
    %c0_i32_0 = arith.constant 0 : i32
    %c0_i32_1 = arith.constant 0 : i32
    return %c0_i32, %c0_i32_0 : i32, i32
  }
  func.func @transform_5(%arg0: i32, %arg1: memref<8xi32, #tpu.memory_space<smem>>, %arg2: memref<8xi32, #tpu.memory_space<smem>>) -> (i32, i32) {
    %c0_i32 = arith.constant 0 : i32
    %c0_i32_0 = arith.constant 0 : i32
    %c0_i32_1 = arith.constant 0 : i32
    return %c0_i32, %c0_i32_0 : i32, i32
  }
  func.func @transform_6(%arg0: i32, %arg1: memref<8xi32, #tpu.memory_space<smem>>, %arg2: memref<8xi32, #tpu.memory_space<smem>>) -> (i32, i32) {
    %c0_i32 = arith.constant 0 : i32
    %c0_i32_0 = arith.constant 0 : i32
    %c0_i32_1 = arith.constant 0 : i32
    return %c0_i32, %c0_i32_0 : i32, i32
  }
  func.func @transform_7(%arg0: i32, %arg1: memref<8xi32, #tpu.memory_space<smem>>, %arg2: memref<8xi32, #tpu.memory_space<smem>>) -> (i32, i32) {
    %c0_i32 = arith.constant 0 : i32
    %c0_i32_0 = arith.constant 0 : i32
    %c0_i32_1 = arith.constant 0 : i32
    return %c0_i32, %c0_i32_0 : i32, i32
  }
  func.func @transform_8(%arg0: i32, %arg1: memref<8xi32, #tpu.memory_space<smem>>, %arg2: memref<8xi32, #tpu.memory_space<smem>>) -> (i32, i32) {
    %c0_i32 = arith.constant 0 : i32
    %c0_i32_0 = arith.constant 0 : i32
    return %arg0, %c0_i32 : i32, i32
  }
}

</mosaic_0001>

<bundles_post_ra>
// kernel: tpu_custom_call.1
= control target key start
LH: loop header
LB: loop body
LE: loop exit
PB: predicated region body
PF: predicated region fallthrough
CT: control target
= control target key end

     0   :  { %s963_s0 = inlined_call_operand.vmem [shape: s32[8], index: 0, kind: input, shape index: {}]   ;;  %s964_s2 = inlined_call_operand.vmem [shape: f32[8,10], index: 2, kind: input, shape index: {}]   ;;  %s965_s3 = inlined_call_operand.vmem [shape: f32[100,50], index: 3, kind: input, shape index: {}]   ;;  %s966_s4 = inlined_call_operand.vmem [shape: f32[200,30], index: 4, kind: input, shape index: {}]   ;;  %s967_s5 = inlined_call_operand.vmem [shape: f32[10,50], index: 5, kind: input, shape index: {}]   ;;  %s968_s6 = inlined_call_operand.vmem [shape: f32[50,128], index: 6, kind: input, shape index: {}]   ;;  %s969_s7 = inlined_call_operand.vmem [shape: f32[50,128], index: 7, kind: input, shape index: {}]   ;;  %s970_s8 = inlined_call_operand.vmem [shape: f32[30,128], index: 8, kind: input, shape index: {}]   ;;  %s971_s9 = inlined_call_operand.vmem [shape: f32[1,128], index: 9, kind: input, shape index: {}]   ;;  %s972_s10 = inlined_call_operand.hbm [shape: f32[8,128], index: 10, kind: output, shape index: {}]   ;;  %s973_s1 = inlined_call_operand.vmem [shape: s32[8], index: 1, kind: input, shape index: {}]  }
   0x1   :  { %s15_s15 = sshll.u32 %s963_s0, 4  ;;  %s19_s18 = sshll.u32 %s973_s1, 4  ;;  %s16_s15 = int_to_ptr.vmem [resolvable:$true] %s15_s15  ;;  %s20_s18 = int_to_ptr.vmem [resolvable:$true] %s19_s18 }
   0x2   :  { %s710_s19 = scalar_lea.vmem %s16_s15, 16  ;;  %p715_p1 = scmp.lt.s32.totalorder %s16_s15, %s16_s15 }
   0x3   :  { %p711_p0 = scmp.ne.s32.totalorder %s16_s15, %s710_s19  ;;  %p716_p2 = scmp.lt.s32.totalorder %s710_s19, %s710_s19 }
   0x5   :  { %p717_p3 = por %p716_p2, %p715_p1 }
   0x7   :  { %p718_p4 = pnand %p717_p3, %p711_p0 }
   0x9   :  { %721 = shalt.err (!%p718_p4)  }
   0xa   :  { %s780_s20 = smov [#allocation6]   ;;  %s722_s21 = scalar_lea.vmem %s20_s18, 16 }
   0xb   :  { %18 = dma.vmem_to_smem %s16_s15, 16, %s780_s20, [#allocation5] }
   0xc   :  { %p723_p5 = scmp.ne.s32.totalorder %s20_s18, %s722_s21  ;;  %p727_p6 = scmp.lt.s32.totalorder %s20_s18, %s20_s18 }
   0xd   :  { %p728_p7 = scmp.lt.s32.totalorder %s722_s21, %s722_s21 }
   0xf   :  { %p729_p8 = por %p728_p7, %p727_p6 }
  0x11   :  { %p730_p9 = pnand %p729_p8, %p723_p5 }
  0x13   :  { %733 = shalt.err (!%p730_p9)  }
  0x14   :  { %s781_s0 = smov [#allocation7]  }
  0x15   :  { %22 = dma.vmem_to_smem %s20_s18, 16, %s781_s0, [#allocation5] }
  0x16   :  { %764 = dma.done.wait [#allocation5], 32 }
  0x17   :  { %765 = vsyncadd [#allocation5], 4294967264 }
  0x18   :  { %24 = sfence }
  0x19   :  { %25 = vsyncpa [#allocation9], 0  ;;  %vm46_vm0 = vcmask 408576   ;;  %vm48_vm1 = vcmask 244736   ;;  %v782_v0 = vmov 0.0   ;;  %s772_s1 = smov 0  }
  0x1a   :  { %47 = vst.msk [vmem:[#allocation2] sm:$0xff] %vm46_vm0, %v782_v0 }
  0x1b   :  { %49 = vst.msk [vmem:[#allocation3] sm:$0xff] %vm48_vm1, %v782_v0 }
  0x1c LB: > { %s57_s22 = sld [smem:[#allocation6 + %s774_s1]]  ;;  %s60_s27 = scalar_lea.vmem [#allocation2], %s774_s1  ;;  %s774_s1 = sphi %s772_s1, %s53_s1  }
  0x1d   : > { %s58_s23 = sld [smem:[#allocation7 + %s774_s1]] }
  0x22   : > { %s59_s26 = scalar_lea.vmem %s965_s3, %s57_s22 }
  0x23   : > { %v78_v1 = vld [vmem:[%s59_s26] sm:$0x1] }
  0x24   : > { %79 = vst [vmem:[%s60_s27] sm:$0x1] %v78_v1 }
  0x25   : > { %104 = vsyncadd [#allocation4], 16  ;;  %s105_s30 = scalar_lea.vmem %s966_s4, %s58_s23  ;;  %s106_s11 = scalar_lea.vmem [#allocation3], %s774_s1 }
  0x26   : > { %v125_v2 = vld [vmem:[%s105_s30] sm:$0x1] }
  0x27   : > { %126 = vst [vmem:[%s106_s11] sm:$0x1] %v125_v2 }
  0x28   : > { %151 = vsyncadd [#allocation4 + $0x1], 16  ;;  %s53_s1 = sadd.s32 1, %s774_s1  }
  0x29   : > { %p52_p10 = scmp.ge.s32.totalorder %s53_s1, 3 }
  0x2a   :  { %v153_v3 = vld [vmem:[%s967_s5] sm:$0xff] (%p52_p10)  ;;  %v154_v4 = vld [vmem:[%s967_s5 + $0x8] sm:$0x3] (%p52_p10)  ;;  %vm159_vm2 = vcmask (%p52_p10), 1041408   ;;  %v783_v5 = vmov (%p52_p10), 0.0|0.0   ;;  %vm784_vm3 = vmmov (%p52_p10), 1  }
  0x2b   :  { %55 = sbr.rel (!%p52_p10) target bundleno = 28 (0x1c), region = 149  ;;  %654 = vmatprep.subr.bf16.mxu0 (%p52_p10), %v783_v5  ;;  %v655_v6 = vpack.c.bf16 (%p52_p10), %v154_v4, %v153_v3  ;;  %vm656_vm4 = vmpackc.low (%p52_p10), %vm159_vm2, %vm784_vm3  ;;  %v233_v7 = vld [vmem:[%s969_s7] sm:$0xff] (%p52_p10)  ;;  %vm785_vm5 = vmmov (%p52_p10), 0   ;;  %v234_v8 = vld [vmem:[%s969_s7 + $0x8] sm:$0xff] (%p52_p10)  ;;  %vm155_vm6 = vcmask (%p52_p10), 80896   ;;  %s776_s28 = smov (%p52_p10), 0  }
  0x2c   :  { %606 = vmatprep.mubr.msk.f32.mxu0 (%p52_p10), %vm785_vm5, %v782_v0  ;;  %v152_v9 = vld [vmem:[%s964_s2] sm:$0xff] (%p52_p10)  ;;  %v659_v10 = vpack.c.bf16 (%p52_p10), %v234_v8, %v233_v7  ;;  %v235_v11 = vld [vmem:[%s969_s7 + $0x10] sm:$0xff] (%p52_p10)  ;;  %v236_v12 = vld [vmem:[%s969_s7 + $0x18] sm:$0xff] (%p52_p10) }
  0x2d   :  { %657 = vmatpush3.bf16.msk.msra.mxu0 (%p52_p10), %vm656_vm4, %v655_v6  ;;  %v662_v13 = vpack.c.bf16 (%p52_p10), %v236_v12, %v235_v11  ;;  %v237_v14 = vld [vmem:[%s969_s7 + $0x20] sm:$0xff] (%p52_p10)  ;;  %v238_v15 = vld [vmem:[%s969_s7 + $0x28] sm:$0xff] (%p52_p10)  ;;  %v239_v17 = vld [vmem:[%s969_s7 + $0x30] sm:$0x3] (%p52_p10) }
  0x2e   :  { %658 = vmatprep.subr.bf16.mxu0 (%p52_p10), %v783_v5  ;;  %v665_v16 = vpack.c.bf16 (%p52_p10), %v238_v15, %v237_v14  ;;  %v569_v20 = vld [vmem:[%s971_s9] ss:$0 sm:$0xff] (%p52_p10) }
  0x30   :  { %607 = vmatmul.mubr.msk.f32.vlgmr.msra.gmra.mrb[0].mxu0 (%p52_p10), %vm155_vm6, %v152_v9 }
  0x31   :  { %660 = vmatpush3.bf16.msra.mxu0 (%p52_p10), %v659_v10  ;;  %623 = vmatprep.mubr.msk.f32.mxu0 (%p52_p10), %vm785_vm5, %v782_v0 }
  0x32   :  { %661 = vmatprep.subr.bf16.mxu0 %v783_v5 }
  0x35   :  { %663 = vmatpush3.bf16.msra.mxu0 %v662_v13 }
  0x36   :  { %664 = vmatprep.subr.bf16.mxu0 %v783_v5 }
  0x39   :  { %666 = vmatpush3.bf16.msra.mxu0 %v665_v16 }
  0x3a   :  { %621 = vmatprep.subr.mxu0 %v782_v0 }
  0x3d   :  { %622 = vmatpush3.msk.msra.mxu0 %vm159_vm2, %v239_v17 }
 0x103   :  { %v229_v18 = vpop.f32.mrb[0].mxu0 }
 0x104   :  { %v608_v19 = vpop.f32.mrb[1].mxu0  ;;  %624 = vmatmul.mubr.msk.f32.vlgmr.msra.gmra.mrb[2].mxu0 %vm46_vm0, %v229_v18 }
 0x1d7   :  { %v320_v21 = vpop.f32.mrb[2].mxu0 }
 0x1d8   :  { %v321_v22 = vadd.f32 %v569_v20, %v320_v21  ;;  %v625_v23 = vpop.f32.mrb[3].mxu0 }
 0x1d9 LB: > { %766 = dma.done.wait [#allocation4], 16  ;;  %s778_s28 = sphi %s776_s28, %s327_s28  }
 0x1da   : > { %767 = vsyncadd [#allocation4], 4294967280 }
 0x1db   : > { %768 = dma.done.wait [#allocation4 + $0x1], 16 }
 0x1dc   : > { %769 = vsyncadd [#allocation4 + $0x1], 4294967280  ;;  %s327_s28 = sadd.s32 1, %s778_s28  }
 0x1dd   : > { %p326_p11 = scmp.ge.s32.totalorder %s327_s28, 3 }
 0x1de   :  { %667 = vmatprep.subr.bf16.mxu1 (%p326_p11), %v783_v5  ;;  %v337_v24 = vld [vmem:[%s968_s6] sm:$0xff] (%p326_p11)  ;;  %v338_v25 = vld [vmem:[%s968_s6 + $0x8] sm:$0xff] (%p326_p11)  ;;  %v339_v26 = vld [vmem:[%s968_s6 + $0x10] sm:$0xff] (%p326_p11)  ;;  %640 = vmatprep.mubr.msk.f32.mxu1 (%p326_p11), %vm785_vm5, %v782_v0  ;;  %vm430_vm7 = vcmask (%p326_p11), 1045504  }
 0x1df   :  { %329 = sbr.rel (!%p326_p11) target bundleno = 473 (0x1d9), region = 160  ;;  %v668_v27 = vpack.c.bf16 (%p326_p11), %v338_v25, %v337_v24  ;;  %v340_v28 = vld [vmem:[%s968_s6 + $0x18] sm:$0xff] (%p326_p11)  ;;  %v341_v30 = vld [vmem:[%s968_s6 + $0x20] sm:$0xff] (%p326_p11)  ;;  %v342_v31 = vld [vmem:[%s968_s6 + $0x28] sm:$0xff] (%p326_p11) }
 0x1e0   :  { %v671_v29 = vpack.c.bf16 (%p326_p11), %v340_v28, %v339_v26  ;;  %v674_v32 = vpack.c.bf16 (%p326_p11), %v342_v31, %v341_v30  ;;  %v422_v33 = vld [vmem:[%s970_s8] sm:$0xff] (%p326_p11)  ;;  %v423_v34 = vld [vmem:[%s970_s8 + $0x8] sm:$0xff] (%p326_p11)  ;;  %v343_v35 = vld [vmem:[%s968_s6 + $0x30] sm:$0x3] (%p326_p11)  ;;  %s786_s6 = smov (%p326_p11), [#allocation8]  }
 0x1e1   :  { %669 = vmatpush3.bf16.msra.mxu1 (%p326_p11), %v668_v27  ;;  %v336_v36 = vld [vmem:[#allocation2] sm:$0xff] (%p326_p11)  ;;  %v677_v37 = vpack.c.bf16 (%p326_p11), %v423_v34, %v422_v33  ;;  %v424_v38 = vld [vmem:[%s970_s8 + $0x10] sm:$0xff] (%p326_p11)  ;;  %v425_v39 = vld [vmem:[%s970_s8 + $0x18] sm:$0x3f] (%p326_p11)  ;;  %s512_s8 = sshll.u32 (%p326_p11), %s786_s6, 4  ;;  %s513_s8 = int_to_ptr.vmem [resolvable:$true] %s512_s8 }
 0x1e2   :  { %670 = vmatprep.subr.bf16.mxu1 (%p326_p11), %v783_v5  ;;  %v680_v40 = vpack.c.bf16 (%p326_p11), %v425_v39, %v424_v38  ;;  %vm681_vm8 = vmpackc.low (%p326_p11), %vm430_vm7, %vm784_vm3  ;;  %v421_v41 = vld [vmem:[#allocation3] sm:$0xff] (%p326_p11)  ;;  %s734_s23 = scalar_lea.vmem (%p326_p11), %s513_s8, 128  ;;  %p739_p13 = scmp.lt.s32.totalorder (%p326_p11), %s513_s8, %s513_s8 }
 0x1e3   :  { %p735_p12 = scmp.ne.s32.totalorder (%p326_p11), %s513_s8, %s734_s23  ;;  %p740_p0 = scmp.lt.s32.totalorder (%p326_p11), %s734_s23, %s734_s23 }
 0x1e5   :  { %672 = vmatpush3.bf16.msra.mxu1 (%p326_p11), %v671_v29  ;;  %p741_p1 = por (%p326_p11), %p740_p0, %p739_p13 }
 0x1e6   :  { %673 = vmatprep.subr.bf16.mxu1 %v783_v5 }
 0x1e7   :  { %p742_p2 = pnand %p741_p1, %p735_p12 }
 0x1e9   :  { %675 = vmatpush3.bf16.msra.mxu1 %v674_v32 }
 0x1ea   :  { %638 = vmatprep.subr.mxu1 %v782_v0 }
 0x1ed   :  { %639 = vmatpush3.msk.msra.mxu1 %vm159_vm2, %v343_v35 }
 0x1ee   :  { %641 = vmatmul.mubr.msk.f32.vlgmr.msra.gmra.mrb[0].mxu1 %vm46_vm0, %v336_v36  ;;  %676 = vmatprep.subr.bf16.mxu1 %v783_v5 }
 0x1ef   :  { %678 = vmatpush3.bf16.msra.mxu1 %v677_v37  ;;  %651 = vmatprep.mubr.msk.f32.mxu1 %vm785_vm5, %v782_v0 }
 0x1f0   :  { %679 = vmatprep.subr.bf16.mxu1 %v783_v5 }
 0x1f3   :  { %682 = vmatpush3.bf16.msk.msra.mxu1 %vm681_vm8, %v680_v40 }
 0x1f6   :  { %652 = vmatmul.mubr.msk.f32.vlgmr.msra.gmra.mrb[0].mxu1 %vm48_vm1, %v421_v41 }
 0x2c9   :  { %v500_v42 = vpop.f32.mrb[0].mxu1 }
 0x2ca   :  { %v684_v43 = vadd.f32 %v500_v42, %v321_v22  ;;  %v653_v44 = vpop.f32.mrb[1].mxu1 }
 0x2cc   :  { %505 = vst [vmem:[#allocation8] sm:$0xff] %v684_v43 }
 0x2cd   :  { %745 = shalt.err (!%p742_p2)
}
 0x2ce   :  { %s746_s26 = scalar_lea.hbm %s972_s10, 128 }
 0x2cf   :  { %p747_p3 = scmp.ne.s32.totalorder %s972_s10, %s746_s26  ;;  %p750_p4 = scmp.lt.u32.totalorder %s746_s26, %s972_s10 }
 0x2d1   :  { %p752_p5 = pnand %p750_p4, %p747_p3 }
 0x2d3   :  { %755 = shalt.err (!%p752_p5)
}
 0x2d4   :  { %515 = dma.vmem_to_hbm [thread:$0]  %s513_s8, 128, %s972_s10, [#allocation9]  }
 0x2d5   :  { %770 = dma.done.wait [#allocation9], 128  }
 0x2d6   :  { %771 = vsyncadd [#allocation9], 4294967168 }
 0x2d7   :  { %519 = vsyncpa [#allocation9], 1 }
 0x2d8   :  { %520 = vsyncmov [#allocation4] }
 0x2db   :  { %s521_s11 = vpop.sfrf %520 }
 0x2dc   :  { %p576_p6 = scmp.ne.s32.totalorder %s521_s11, 0 }
 0x2de   :  { %525 = shalt.err (%p576_p6)  }
 0x2df   :  { %527 = vsyncmov [#allocation4 + $0x1] }
 0x2e2   :  { %s528_s12 = vpop.sfrf %527 }
 0x2e3   :  { %p577_p7 = scmp.ne.s32.totalorder %s528_s12, 0 }
 0x2e5   :  { %532 = shalt.err (%p577_p7)  }

</bundles_post_ra>
